<compile_context>
chip_gen: v5e
topology: v5e:2x2
jax: 0.10.0
libtpu: 0.0.40
codegen_flags: <defaults>
</compile_context>

<pallas_src>
import jax
import jax.numpy as jnp
from jax.experimental import pallas as pl
from jax.experimental.pallas import tpu as pltpu

KH = KW = 4
BN_EPS = 1e-5


def _make_gate_kernel(nb, W, Ho, Wo):
    """Kernel processing `nb` samples per grid step, grid=(ceil(N/nb),)."""
    # Last computed output pixel is (Ho-1, Wo-1); slices never read past H*W.
    Mv = (Ho - 1) * W + Wo

    def kernel(x_ref, wconv_ref, bn1s_ref, bn1b_ref,
               wfc1_ref, bn2s_ref, bn2b_ref, wfc2_ref, out_ref):
        # x_ref:     (nb, Cin, H*W) f32  raw NCHW sample, spatial flattened
        # wconv_ref: (Cout, KH*KW*Cin) bf16, K ordered (kh, kw, cin)
        # bn1*:      (Cout, 1) f32 folded BN;  wfc1: (Cmid, Cout);  bn2*: (Cmid, 1)
        # wfc2:      (Cout, Cmid) f32
        # out_ref:   (nb, Cout, 1) f32 per-sample channel-attention sigmoid

        # Static 0/1 mask over output-pixel lanes: pixel m valid iff m % W < Wo.
        col = jax.lax.broadcasted_iota(jnp.int32, (1, Mv), 1)
        mask = ((col % W) < Wo).astype(jnp.float32)            # (1, Mv)

        wconv = wconv_ref[...]                                  # (Cout, K) bf16
        bn1s = bn1s_ref[...]                                    # (Cout, 1)
        bn1b = bn1b_ref[...]
        inv_area = 1.0 / (Ho * Wo)

        pooled_cols = []
        for b in range(nb):
            xb = x_ref[b].astype(jnp.bfloat16)                  # (Cin, H*W)
            # In-kernel im2col: 16 lane-shifted slices stacked along the
            # contraction (sublane) axis -> (KH*KW*Cin, Mv) bf16.
            slab = jnp.concatenate(
                [xb[:, i * W + j:i * W + j + Mv]
                 for i in range(KH) for j in range(KW)], axis=0)
            # Fused 4x4 conv: ONE bf16 x bf16 MXU matmul, K = KH*KW*Cin, f32 acc.
            y = jnp.dot(wconv, slab,
                        preferred_element_type=jnp.float32)     # (Cout, Mv)
            # Folded BatchNorm (eval) + ReLU, then zero wrap-around columns.
            # Post-ReLU y >= 0, so zeroed columns are neutral for sum and max.
            y = jnp.maximum(y * bn1s + bn1b, 0.0) * mask
            avg = jnp.sum(y, axis=1, keepdims=True) * inv_area  # (Cout, 1)
            mx = jnp.max(y, axis=1, keepdims=True)               # (Cout, 1)
            pooled_cols.append(avg)
            pooled_cols.append(mx)

        # ChannelAttention shared MLP: avg/max branches of all nb samples fused.
        pooled = jnp.concatenate(pooled_cols, axis=1)            # (Cout, 2*nb)
        h = jnp.dot(wfc1_ref[...], pooled,
                    preferred_element_type=jnp.float32)          # (Cmid, 2*nb)
        h = jnp.maximum(h * bn2s_ref[...] + bn2b_ref[...], 0.0)
        r = jnp.dot(wfc2_ref[...], h,
                    preferred_element_type=jnp.float32)          # (Cout, 2*nb)
        for b in range(nb):
            out_ref[b] = jax.nn.sigmoid(r[:, 2 * b:2 * b + 1] +
                                        r[:, 2 * b + 1:2 * b + 2])  # (Cout, 1)

    return kernel


def init_params(key, inplanes):
    cin = 2 * inplanes
    cout = 4 * inplanes              # conv output channels == attention in_planes
    cmid = max(cout // 8, 1)         # ChannelAttention hidden width (in_planes // 8)
    k = jax.random.split(key, 7)
    # conv weight generated as (kh, kw, Cin, Cout) (== permute of torch (Cout,Cin,kh,kw))
    w_conv = 0.05 * jax.random.normal(k[0], (KH, KW, cin, cout), jnp.float32)
    gamma1 = 1.0 + 0.1 * jax.random.normal(k[1], (cout,), jnp.float32)
    beta1 = 0.1 * jax.random.normal(k[2], (cout,), jnp.float32)
    w_fc1 = 0.1 * jax.random.normal(k[3], (cout, cmid), jnp.float32)
    gamma2 = 1.0 + 0.1 * jax.random.normal(k[4], (cmid,), jnp.float32)
    beta2 = 0.1 * jax.random.normal(k[5], (cmid,), jnp.float32)
    w_fc2 = 0.1 * jax.random.normal(k[6], (cmid, cout), jnp.float32)
    # Fold BatchNorm (eval mode, running_mean=0, running_var=1) into scale/shift,
    # shaped (C, 1) for the transposed (channels-on-sublanes) activation layout.
    bn1_scale = (gamma1 / jnp.sqrt(1.0 + BN_EPS)).reshape(cout, 1)
    bn1_shift = beta1.reshape(cout, 1)
    bn2_scale = (gamma2 / jnp.sqrt(1.0 + BN_EPS)).reshape(cmid, 1)
    bn2_shift = beta2.reshape(cmid, 1)
    # Conv weight for the kernel: (Cout, KH*KW*Cin) with K ordered (kh, kw, cin),
    # stored in bf16 (native MXU operand path).
    w_conv_t = jnp.transpose(w_conv, (3, 0, 1, 2)).reshape(
        cout, KH * KW * cin).astype(jnp.bfloat16)
    return dict(
        w_conv_t=w_conv_t,
        bn1_scale=bn1_scale, bn1_shift=bn1_shift,
        w_fc1_t=w_fc1.T,                 # (Cmid, Cout)
        bn2_scale=bn2_scale, bn2_shift=bn2_shift,
        w_fc2_t=w_fc2.T,                 # (Cout, Cmid)
    )


def gate_for_old_forward(x_nchw, params, batch_block=1):
    N, Cin, H, W = x_nchw.shape
    Ho, Wo = H - KH + 1, W - KW + 1
    Cout, K = params["w_conv_t"].shape
    Cmid = params["w_fc1_t"].shape[0]
    assert K == KH * KW * Cin
    Mv = (Ho - 1) * W + Wo

    nb = max(1, min(batch_block, N))
    n_pad = (-N) % nb
    x = x_nchw.reshape(N, Cin, H * W)          # free reshape, no HBM pre-pass
    if n_pad:                                  # only if nb does not divide N
        x = jnp.pad(x, ((0, n_pad), (0, 0), (0, 0)))
    Np = N + n_pad

    flops = int(Np * (2 * Cout * K * Mv + 4 * Cout * Mv
                      + 2 * 2 * (Cmid * Cout + Cout * Cmid)))
    bytes_accessed = int(x.size * 4 + params["w_conv_t"].size * 2
                         + (Cout * Cmid * 2 + 2 * Cout + 2 * Cmid) * 4
                         + Np * Cout * 4)

    att = pl.pallas_call(
        _make_gate_kernel(nb, W, Ho, Wo),
        out_shape=jax.ShapeDtypeStruct((Np, Cout, 1), jnp.float32),
        grid_spec=pltpu.PrefetchScalarGridSpec(
            num_scalar_prefetch=0,
            grid=(Np // nb,),
            in_specs=[
                pl.BlockSpec((nb, Cin, H * W), lambda n: (n, 0, 0)),
                pl.BlockSpec((Cout, K), lambda n: (0, 0)),
                pl.BlockSpec((Cout, 1), lambda n: (0, 0)),
                pl.BlockSpec((Cout, 1), lambda n: (0, 0)),
                pl.BlockSpec((Cmid, Cout), lambda n: (0, 0)),
                pl.BlockSpec((Cmid, 1), lambda n: (0, 0)),
                pl.BlockSpec((Cmid, 1), lambda n: (0, 0)),
                pl.BlockSpec((Cout, Cmid), lambda n: (0, 0)),
            ],
            out_specs=pl.BlockSpec((nb, Cout, 1), lambda n: (n, 0, 0)),
        ),
        compiler_params=pltpu.CompilerParams(
            dimension_semantics=("parallel",),
            vmem_limit_bytes=32 * 1024 * 1024),
        cost_estimate=pl.CostEstimate(flops=flops,
                                      transcendentals=int(Np * Cout),
                                      bytes_accessed=bytes_accessed),
    )(x, params["w_conv_t"], params["bn1_scale"], params["bn1_shift"],
      params["w_fc1_t"], params["bn2_scale"], params["bn2_shift"],
      params["w_fc2_t"])

    # flatten(x, 1).mean(0) -> sigmoid; negligible epilogue kept in XLA so the
    # batch grid axis stays "parallel".  Padded samples (if any) are excluded.
    return jax.nn.sigmoid(jnp.mean(att[:N, :, 0], axis=0))      # (Cout,)


# ----------------------------- pure-JAX reference -----------------------------
def _reference_forward(x_nchw, params):
    """Pure-JAX reference with the same bf16 rounding of x / conv weight."""
    N, Cin, H, W = x_nchw.shape
    Ho, Wo = H - KH + 1, W - KW + 1
    x = jnp.transpose(x_nchw, (0, 2, 3, 1)).astype(jnp.bfloat16).astype(jnp.float32)
    cols = []
    for i in range(KH):
        for j in range(KW):
            cols.append(x[:, i:i + Ho, j:j + Wo, :])
    patches = jnp.concatenate(cols, axis=-1).reshape(N, Ho * Wo, KH * KW * Cin)
    w2 = params["w_conv_t"].astype(jnp.float32)                 # (Cout, K)
    y = jnp.einsum("nmk,ck->nmc", patches, w2,
                   preferred_element_type=jnp.float32)
    y = jnp.maximum(y * params["bn1_scale"][:, 0] + params["bn1_shift"][:, 0], 0.0)
    avg = y.mean(axis=1)                                         # (N, Cout)
    mx = y.max(axis=1)                                           # (N, Cout)

    wfc1 = params["w_fc1_t"].T                                   # (Cout, Cmid)
    wfc2 = params["w_fc2_t"].T                                   # (Cmid, Cout)

    def fc(v):
        h = jnp.maximum((v @ wfc1) * params["bn2_scale"][:, 0]
                        + params["bn2_shift"][:, 0], 0.0)
        return h @ wfc2

    att = jax.nn.sigmoid(fc(avg) + fc(mx))                       # (N, Cout)
    return jax.nn.sigmoid(att.mean(axis=0))                      # (Cout,)


if __name__ == "__main__":
    inplanes = 4
    N, H, W = 2, 16, 16
    key = jax.random.PRNGKey(0)
    k_x, k_x2, k_p = jax.random.split(key, 3)
    params = init_params(k_p, inplanes)

    # Config 1: one sample per grid step (keeps >= 2 parallel blocks for v7x).
    x = jax.random.normal(k_x, (N, 2 * inplanes, H, W), jnp.float32)  # NCHW
    out = jax.block_until_ready(gate_for_old_forward(x, params, batch_block=1))
    ref = jax.block_until_ready(_reference_forward(x, params))
    assert out.shape == (4 * inplanes,)
    assert jnp.allclose(out, ref, rtol=1e-4, atol=3e-5), (out, ref)

    # Config 2: batched grid step (2 samples/step) + batch-padding path.
    N2 = 5
    x2 = jax.random.normal(k_x2, (N2, 2 * inplanes, H, W), jnp.float32)
    out2 = jax.block_until_ready(gate_for_old_forward(x2, params, batch_block=2))
    ref2 = jax.block_until_ready(_reference_forward(x2, params))
    assert jnp.allclose(out2, ref2, rtol=1e-4, atol=3e-5), (out2, ref2)

    print("KERNEL_OK")
</pallas_src>

<mosaic_0001>
module attributes {stable_mosaic.version = 11 : i64} {
  func.func @kernel(%arg0: i32, %arg1: memref<1x8x256xf32, #tpu.memory_space<vmem>>, %arg2: memref<16x128xbf16, #tpu.memory_space<vmem>>, %arg3: memref<16x1xf32, #tpu.memory_space<vmem>>, %arg4: memref<16x1xf32, #tpu.memory_space<vmem>>, %arg5: memref<2x16xf32, #tpu.memory_space<vmem>>, %arg6: memref<2x1xf32, #tpu.memory_space<vmem>>, %arg7: memref<2x1xf32, #tpu.memory_space<vmem>>, %arg8: memref<16x2xf32, #tpu.memory_space<vmem>>, %arg9: memref<1x16x1xf32, #tpu.memory_space<vmem>>) attributes {dimension_semantics = [#tpu.dimension_semantics<parallel>], iteration_bounds = array<i64: 2>, scalar_prefetch = 0 : i64, scratch_operands = 0 : i64, tpu.core_type = #tpu.core_type<tc>, window_params = [{transform_indices = @transform_0, window_bounds = array<i64: 1, 8, 256>}, {pipeline_mode = #tpu.pipeline_mode<synchronous>, transform_indices = @transform_1, window_bounds = array<i64: 16, 128>}, {pipeline_mode = #tpu.pipeline_mode<synchronous>, transform_indices = @transform_2, window_bounds = array<i64: 16, 1>}, {pipeline_mode = #tpu.pipeline_mode<synchronous>, transform_indices = @transform_3, window_bounds = array<i64: 16, 1>}, {pipeline_mode = #tpu.pipeline_mode<synchronous>, transform_indices = @transform_4, window_bounds = array<i64: 2, 16>}, {pipeline_mode = #tpu.pipeline_mode<synchronous>, transform_indices = @transform_5, window_bounds = array<i64: 2, 1>}, {pipeline_mode = #tpu.pipeline_mode<synchronous>, transform_indices = @transform_6, window_bounds = array<i64: 2, 1>}, {pipeline_mode = #tpu.pipeline_mode<synchronous>, transform_indices = @transform_7, window_bounds = array<i64: 16, 2>}, {transform_indices = @transform_8, window_bounds = array<i64: 1, 16, 1>}]} {
    %0 = tpu.iota {dimensions = array<i32: 1>} : vector<1x205xi32>
    %c16_i32 = arith.constant 16 : i32
    %c0_i32 = arith.constant 0 : i32
    %1 = arith.cmpi eq, %c16_i32, %c0_i32 : i32
    %c1_i32 = arith.constant 1 : i32
    %2 = arith.select %1, %c1_i32, %c16_i32 : i32
    %3 = vector.broadcast %2 : i32 to vector<1x205xi32>
    %4 = arith.remsi %0, %3 : vector<1x205xi32>
    %c0_i32_0 = arith.constant 0 : i32
    %5 = vector.broadcast %c0_i32_0 : i32 to vector<1x205xi32>
    %6 = arith.cmpi ne, %4, %5 : vector<1x205xi32>
    %c0_i32_1 = arith.constant 0 : i32
    %7 = vector.broadcast %c0_i32_1 : i32 to vector<1x205xi32>
    %8 = arith.cmpi slt, %4, %7 : vector<1x205xi32>
    %c0_i32_2 = arith.constant 0 : i32
    %9 = arith.cmpi slt, %2, %c0_i32_2 : i32
    %10 = vector.broadcast %9 : i1 to vector<1x205xi1>
    %11 = vector.broadcast %10 : vector<1x205xi1> to vector<1x205xi1>
    %12 = arith.xori %8, %11 : vector<1x205xi1>
    %13 = arith.andi %12, %6 : vector<1x205xi1>
    %14 = vector.broadcast %2 : i32 to vector<1x205xi32>
    %15 = arith.addi %4, %14 : vector<1x205xi32>
    %16 = arith.select %13, %15, %4 : vector<1x205xi1>, vector<1x205xi32>
    %c13_i32 = arith.constant 13 : i32
    %17 = vector.broadcast %c13_i32 : i32 to vector<1x205xi32>
    %18 = arith.cmpi slt, %16, %17 : vector<1x205xi32>
    %19 = arith.extui %18 : vector<1x205xi1> to vector<1x205xi32>
    %20 = arith.sitofp %19 : vector<1x205xi32> to vector<1x205xf32>
    %c0 = arith.constant 0 : index
    %c0_3 = arith.constant 0 : index
    %21 = vector.load %arg2[%c0, %c0_3] : memref<16x128xbf16, #tpu.memory_space<vmem>>, vector<16x128xbf16>
    %c0_4 = arith.constant 0 : index
    %c0_5 = arith.constant 0 : index
    %22 = vector.load %arg3[%c0_4, %c0_5] : memref<16x1xf32, #tpu.memory_space<vmem>>, vector<16x1xf32>
    %c0_6 = arith.constant 0 : index
    %c0_7 = arith.constant 0 : index
    %23 = vector.load %arg4[%c0_6, %c0_7] : memref<16x1xf32, #tpu.memory_space<vmem>>, vector<16x1xf32>
    %c0_8 = arith.constant 0 : index
    %c0_9 = arith.constant 0 : index
    %c0_10 = arith.constant 0 : index
    %24 = vector.load %arg1[%c0_8, %c0_9, %c0_10] : memref<1x8x256xf32, #tpu.memory_space<vmem>>, vector<1x8x256xf32>
    %25 = vector.shape_cast %24 : vector<1x8x256xf32> to vector<8x256xf32>
    %26 = arith.truncf %25 : vector<8x256xf32> to vector<8x256xbf16>
    %27 = vector.extract_strided_slice %26 {offsets = [0, 0], sizes = [8, 205], strides = [1, 1]} : vector<8x256xbf16> to vector<8x205xbf16>
    %28 = vector.extract_strided_slice %26 {offsets = [0, 1], sizes = [8, 205], strides = [1, 1]} : vector<8x256xbf16> to vector<8x205xbf16>
    %29 = vector.extract_strided_slice %26 {offsets = [0, 2], sizes = [8, 205], strides = [1, 1]} : vector<8x256xbf16> to vector<8x205xbf16>
    %30 = vector.extract_strided_slice %26 {offsets = [0, 3], sizes = [8, 205], strides = [1, 1]} : vector<8x256xbf16> to vector<8x205xbf16>
    %31 = vector.extract_strided_slice %26 {offsets = [0, 16], sizes = [8, 205], strides = [1, 1]} : vector<8x256xbf16> to vector<8x205xbf16>
    %32 = vector.extract_strided_slice %26 {offsets = [0, 17], sizes = [8, 205], strides = [1, 1]} : vector<8x256xbf16> to vector<8x205xbf16>
    %33 = vector.extract_strided_slice %26 {offsets = [0, 18], sizes = [8, 205], strides = [1, 1]} : vector<8x256xbf16> to vector<8x205xbf16>
    %34 = vector.extract_strided_slice %26 {offsets = [0, 19], sizes = [8, 205], strides = [1, 1]} : vector<8x256xbf16> to vector<8x205xbf16>
    %35 = vector.extract_strided_slice %26 {offsets = [0, 32], sizes = [8, 205], strides = [1, 1]} : vector<8x256xbf16> to vector<8x205xbf16>
    %36 = vector.extract_strided_slice %26 {offsets = [0, 33], sizes = [8, 205], strides = [1, 1]} : vector<8x256xbf16> to vector<8x205xbf16>
    %37 = vector.extract_strided_slice %26 {offsets = [0, 34], sizes = [8, 205], strides = [1, 1]} : vector<8x256xbf16> to vector<8x205xbf16>
    %38 = vector.extract_strided_slice %26 {offsets = [0, 35], sizes = [8, 205], strides = [1, 1]} : vector<8x256xbf16> to vector<8x205xbf16>
    %39 = vector.extract_strided_slice %26 {offsets = [0, 48], sizes = [8, 205], strides = [1, 1]} : vector<8x256xbf16> to vector<8x205xbf16>
    %40 = vector.extract_strided_slice %26 {offsets = [0, 49], sizes = [8, 205], strides = [1, 1]} : vector<8x256xbf16> to vector<8x205xbf16>
    %41 = vector.extract_strided_slice %26 {offsets = [0, 50], sizes = [8, 205], strides = [1, 1]} : vector<8x256xbf16> to vector<8x205xbf16>
    %42 = vector.extract_strided_slice %26 {offsets = [0, 51], sizes = [8, 205], strides = [1, 1]} : vector<8x256xbf16> to vector<8x205xbf16>
    %43 = tpu.concatenate %27, %28, %29, %30, %31, %32, %33, %34, %35, %36, %37, %38, %39, %40, %41, %42 in 0 : vector<8x205xbf16>, vector<8x205xbf16>, vector<8x205xbf16>, vector<8x205xbf16>, vector<8x205xbf16>, vector<8x205xbf16>, vector<8x205xbf16>, vector<8x205xbf16>, vector<8x205xbf16>, vector<8x205xbf16>, vector<8x205xbf16>, vector<8x205xbf16>, vector<8x205xbf16>, vector<8x205xbf16>, vector<8x205xbf16>, vector<8x205xbf16> -> vector<128x205xbf16>
    %cst = arith.constant dense<0.000000e+00> : vector<16x205xf32>
    %44 = tpu.matmul %21, %43, %cst {dimension_numbers = #tpu.dot_dimension_numbers<[1], [0], [0], [1], [0, 0, 1, 1], [], []>} : vector<16x128xbf16>, vector<128x205xbf16>, vector<16x205xf32> -> vector<16x205xf32>
    %45 = vector.broadcast %22 : vector<16x1xf32> to vector<16x205xf32>
    %46 = arith.mulf %44, %45 : vector<16x205xf32>
    %47 = vector.broadcast %23 : vector<16x1xf32> to vector<16x205xf32>
    %48 = arith.addf %46, %47 : vector<16x205xf32>
    %cst_11 = arith.constant 0.000000e+00 : f32
    %49 = vector.broadcast %cst_11 : f32 to vector<16x205xf32>
    %50 = arith.maximumf %48, %49 : vector<16x205xf32>
    %51 = vector.broadcast %20 : vector<1x205xf32> to vector<16x205xf32>
    %52 = arith.mulf %50, %51 : vector<16x205xf32>
    %cst_12 = arith.constant dense<0.000000e+00> : vector<16xf32>
    %53 = vector.multi_reduction <add>, %52, %cst_12 [1] : vector<16x205xf32> to vector<16xf32>
    %54 = vector.shape_cast %53 : vector<16xf32> to vector<16x1xf32>
    %cst_13 = arith.constant 5.917160e-03 : f32
    %55 = vector.broadcast %cst_13 : f32 to vector<16x1xf32>
    %56 = arith.mulf %54, %55 : vector<16x1xf32>
    %cst_14 = arith.constant dense<0xFF800000> : vector<16xf32>
    %57 = vector.multi_reduction <maximumf>, %52, %cst_14 [1] : vector<16x205xf32> to vector<16xf32>
    %58 = vector.shape_cast %57 : vector<16xf32> to vector<16x1xf32>
    %59 = tpu.concatenate %56, %58 in 1 : vector<16x1xf32>, vector<16x1xf32> -> vector<16x2xf32>
    %c0_15 = arith.constant 0 : index
    %c0_16 = arith.constant 0 : index
    %60 = vector.load %arg5[%c0_15, %c0_16] : memref<2x16xf32, #tpu.memory_space<vmem>>, vector<2x16xf32>
    %cst_17 = arith.constant dense<0.000000e+00> : vector<2x2xf32>
    %61 = tpu.matmul %60, %59, %cst_17 {dimension_numbers = #tpu.dot_dimension_numbers<[1], [0], [0], [1], [0, 0, 1, 1], [], []>} : vector<2x16xf32>, vector<16x2xf32>, vector<2x2xf32> -> vector<2x2xf32>
    %c0_18 = arith.constant 0 : index
    %c0_19 = arith.constant 0 : index
    %62 = vector.load %arg6[%c0_18, %c0_19] : memref<2x1xf32, #tpu.memory_space<vmem>>, vector<2x1xf32>
    %63 = vector.broadcast %62 : vector<2x1xf32> to vector<2x2xf32>
    %64 = arith.mulf %61, %63 : vector<2x2xf32>
    %c0_20 = arith.constant 0 : index
    %c0_21 = arith.constant 0 : index
    %65 = vector.load %arg7[%c0_20, %c0_21] : memref<2x1xf32, #tpu.memory_space<vmem>>, vector<2x1xf32>
    %66 = vector.broadcast %65 : vector<2x1xf32> to vector<2x2xf32>
    %67 = arith.addf %64, %66 : vector<2x2xf32>
    %cst_22 = arith.constant 0.000000e+00 : f32
    %68 = vector.broadcast %cst_22 : f32 to vector<2x2xf32>
    %69 = arith.maximumf %67, %68 : vector<2x2xf32>
    %c0_23 = arith.constant 0 : index
    %c0_24 = arith.constant 0 : index
    %70 = vector.load %arg8[%c0_23, %c0_24] : memref<16x2xf32, #tpu.memory_space<vmem>>, vector<16x2xf32>
    %cst_25 = arith.constant dense<0.000000e+00> : vector<16x2xf32>
    %71 = tpu.matmul %70, %69, %cst_25 {dimension_numbers = #tpu.dot_dimension_numbers<[1], [0], [0], [1], [0, 0, 1, 1], [], []>} : vector<16x2xf32>, vector<2x2xf32>, vector<16x2xf32> -> vector<16x2xf32>
    %72 = vector.extract_strided_slice %71 {offsets = [0, 0], sizes = [16, 1], strides = [1, 1]} : vector<16x2xf32> to vector<16x1xf32>
    %73 = vector.extract_strided_slice %71 {offsets = [0, 1], sizes = [16, 1], strides = [1, 1]} : vector<16x2xf32> to vector<16x1xf32>
    %74 = arith.addf %72, %73 : vector<16x1xf32>
    %75 = arith.negf %74 : vector<16x1xf32>
    %76 = math.exp %75 : vector<16x1xf32>
    %cst_26 = arith.constant 1.000000e+00 : f32
    %77 = vector.broadcast %cst_26 : f32 to vector<16x1xf32>
    %78 = arith.addf %77, %76 : vector<16x1xf32>
    %79 = arith.divf %77, %78 : vector<16x1xf32>
    %c0_27 = arith.constant 0 : index
    %c0_28 = arith.constant 0 : index
    %c0_29 = arith.constant 0 : index
    %80 = vector.load %arg9[%c0_27, %c0_28, %c0_29] : memref<1x16x1xf32, #tpu.memory_space<vmem>>, vector<1x16x1xf32>
    %81 = vector.shape_cast %80 : vector<1x16x1xf32> to vector<16x1xf32>
    %82 = vector.shape_cast %79 : vector<16x1xf32> to vector<1x16x1xf32>
    tpu.vector_store %arg9[%c0_27, %c0_28, %c0_29], %82 {strides = array<i32>} : memref<1x16x1xf32, #tpu.memory_space<vmem>>, vector<1x16x1xf32>,
    return
  }
  func.func @transform_0(%arg0: i32) -> (i32, i32, i32) {
    %c0_i32 = arith.constant 0 : i32
    %c0_i32_0 = arith.constant 0 : i32
    %c0_i32_1 = arith.constant 0 : i32
    return %arg0, %c0_i32, %c0_i32_0 : i32, i32, i32
  }
  func.func @transform_1(%arg0: i32) -> (i32, i32) {
    %c0_i32 = arith.constant 0 : i32
    %c0_i32_0 = arith.constant 0 : i32
    %c0_i32_1 = arith.constant 0 : i32
    return %c0_i32, %c0_i32_0 : i32, i32
  }
  func.func @transform_2(%arg0: i32) -> (i32, i32) {
    %c0_i32 = arith.constant 0 : i32
    %c0_i32_0 = arith.constant 0 : i32
    %c0_i32_1 = arith.constant 0 : i32
    return %c0_i32, %c0_i32_0 : i32, i32
  }
  func.func @transform_3(%arg0: i32) -> (i32, i32) {
    %c0_i32 = arith.constant 0 : i32
    %c0_i32_0 = arith.constant 0 : i32
    %c0_i32_1 = arith.constant 0 : i32
    return %c0_i32, %c0_i32_0 : i32, i32
  }
  func.func @transform_4(%arg0: i32) -> (i32, i32) {
    %c0_i32 = arith.constant 0 : i32
    %c0_i32_0 = arith.constant 0 : i32
    %c0_i32_1 = arith.constant 0 : i32
    return %c0_i32, %c0_i32_0 : i32, i32
  }
  func.func @transform_5(%arg0: i32) -> (i32, i32) {
    %c0_i32 = arith.constant 0 : i32
    %c0_i32_0 = arith.constant 0 : i32
    %c0_i32_1 = arith.constant 0 : i32
    return %c0_i32, %c0_i32_0 : i32, i32
  }
  func.func @transform_6(%arg0: i32) -> (i32, i32) {
    %c0_i32 = arith.constant 0 : i32
    %c0_i32_0 = arith.constant 0 : i32
    %c0_i32_1 = arith.constant 0 : i32
    return %c0_i32, %c0_i32_0 : i32, i32
  }
  func.func @transform_7(%arg0: i32) -> (i32, i32) {
    %c0_i32 = arith.constant 0 : i32
    %c0_i32_0 = arith.constant 0 : i32
    %c0_i32_1 = arith.constant 0 : i32
    return %c0_i32, %c0_i32_0 : i32, i32
  }
  func.func @transform_8(%arg0: i32) -> (i32, i32, i32) {
    %c0_i32 = arith.constant 0 : i32
    %c0_i32_0 = arith.constant 0 : i32
    %c0_i32_1 = arith.constant 0 : i32
    return %arg0, %c0_i32, %c0_i32_0 : i32, i32, i32
  }
}

</mosaic_0001>

<bundles_post_ra>
// kernel: tpu_custom_call.1
= control target key start
LH: loop header
LB: loop body
LE: loop exit
PB: predicated region body
PF: predicated region fallthrough
CT: control target
= control target key end

     0   :  { %s913_s27 = smov 0   ;;  %s1032_s0 = inlined_call_operand.vmem [shape: f32[2,8,256], index: 0, kind: input, shape index: {}]   ;;  %s1033_s1 = inlined_call_operand.vmem [shape: bf16[16,128], index: 1, kind: input, shape index: {}]   ;;  %s1034_s2 = inlined_call_operand.vmem [shape: f32[16,1], index: 2, kind: input, shape index: {}]   ;;  %s1035_s3 = inlined_call_operand.vmem [shape: f32[16,1], index: 3, kind: input, shape index: {}]   ;;  %s1036_s4 = inlined_call_operand.vmem [shape: f32[2,16], index: 4, kind: input, shape index: {}]   ;;  %s1037_s5 = inlined_call_operand.vmem [shape: f32[2,1], index: 5, kind: input, shape index: {}]   ;;  %s1038_s6 = inlined_call_operand.vmem [shape: f32[2,1], index: 6, kind: input, shape index: {}]   ;;  %s1039_s7 = inlined_call_operand.vmem [shape: f32[16,2], index: 7, kind: input, shape index: {}]   ;;  %s1040_s8 = inlined_call_operand.vmem [shape: f32[2,16,1], index: 8, kind: output, shape index: {}]  }
   0x1 LB: > { %s781_s28 = sadd.s32 4294967295, %s849_s27   ;;  %p785_p0 = scmp.ge.s32.totalorder %s849_s27, 1  ;;  %s849_s27 = sphi %s913_s27, %s18_s27  }
   0x2   : > { %p262_p1 = scmp.lt.s32.totalorder %s849_s27, 3 }
   0x4   : > { %p263_p2 = pnand %p785_p0, %p262_p1 }
   0x5   : > { %p296_p3 = scmp.lt.s32.totalorder (!%p263_p2), %s781_s28, 1  ;;  %s851_s11 = smov (!%p263_p2), 77  }
   0x6   : > { %266 = sbr.rel (%p263_p2) target bundleno = 912 (0x390), region = 52  ;;  %s852_s12 = smov (!%p263_p2), 78  }
   0x7   : > { %s853_s13 = smov (!%p263_p2), 80   ;;  %s854_s14 = smov (!%p263_p2), 79  }
   0x8   : > { %s855_s15 = smov (!%p263_p2), 94   ;;  %s856_s16 = smov (!%p263_p2), 93  }
   0x9   : > { %s857_s17 = smov (!%p263_p2), 96   ;;  %s858_s18 = smov (!%p263_p2), 95  }
   0xa   : > { %s859_s19 = smov (!%p263_p2), 110   ;;  %s860_s20 = smov (!%p263_p2), 109  }
   0xb   : > { %s1042_s28 = smov (!%p296_p3, %s781_s28), 1  ;;  %s861_s21 = smov 112   ;;  %vm441_vm0 = vcmask 629760   ;;  %vm435_vm1 = vcmask 637952   ;;  %vm443_vm2 = vcmask 1043456   ;;  %vm423_vm3 = vcmask 654336  }
   0xc   : > { %s804_s29 = sshll.u32 %s1042_s28, 4  ;;  %s862_s22 = smov 111   ;;  %vm429_vm4 = vcmask 646144   ;;  %vm417_vm5 = vcmask 760832   ;;  %vm411_vm6 = vcmask 769024   ;;  %vm399_vm7 = vcmask 785408  }
   0xd   : > { %s300_s10 = scalar_lea.vmem %s1032_s0, %s804_s29  ;;  %s863_s23 = smov 126   ;;  %vm405_vm8 = vcmask 777216   ;;  %vm387_vm9 = vcmask 900096   ;;  %vm393_vm10 = vcmask 891904   ;;  %v341_v48 = vld [vmem:[%s1034_s2] sm:$0xff]  ;;  %v342_v49 = vld [vmem:[%s1034_s2 + $0x8] sm:$0xff] }
   0xe   : > { %v345_v0 = vld [vmem:[%s300_s10] sm:$0xff]  ;;  %v346_v1 = vld [vmem:[%s300_s10 + $0x8] sm:$0xff]  ;;  %s864_s24 = smov 125   ;;  %s865_s25 = smov 127   ;;  %v866_v50 = vmov 0   ;;  %vm381_vm11 = vcmask 908288  }
   0xf   : > { %v347_v2 = vpack.c.bf16 %v346_v1, %v345_v0  ;;  %833 = vset.pattern.permute.xlu1 %v866_v50  ;;  %v344_v51 = vld [vmem:[%s1035_s3 + $0x8] sm:$0xff]  ;;  %832 = vset.pattern.permute.xlu0 %v866_v50  ;;  %vm375_vm12 = vcmask 916480   ;;  %v343_v58 = vld [vmem:[%s1035_s3] sm:$0xff]  ;;  %vm363_vm13 = vcmask 1031168   ;;  %vm369_vm14 = vcmask 1022976   ;;  %s305_s10 = scalar_lea.vmem %s1040_s8, %s804_s29 }
  0x10   : > { %834 = vset.pattern.permute.xlu2 %v866_v50  ;;  %vm357_vm15 = vcmask 1039360   ;;  %v632_v50 = vld [vmem:[%s1038_s6] sm:$0x3] }
  0x11   : > { %v349_v3 = vunpack.c.l.b16 %v347_v2  ;;  %v350_v5 = vunpack.c.h.b16 %v347_v2 }
  0x13   : > { %v929_v4 = vpack.c.b16 %v349_v3, %v349_v3  ;;  %v934_v6 = vpack.c.b16 %v350_v5, %v350_v5 }
  0x15   : > { %437 = vrot.lane.b32.xlu1 %v929_v4, %s851_s11  ;;  %431 = vrot.lane.b32.xlu0 %v929_v4, %s852_s12 }
  0x16   : > { %419 = vrot.lane.b32.xlu2 %v929_v4, %s853_s13 }
  0x1d   : > { %439 = vrot.lane.b32.xlu1 %v934_v6, %s851_s11  ;;  %433 = vrot.lane.b32.xlu0 %v934_v6, %s852_s12 }
  0x1e   : > { %421 = vrot.lane.b32.xlu2 %v934_v6, %s853_s13 }
  0x25   : > { %427 = vrot.lane.b32.xlu1 %v934_v6, %s854_s14  ;;  %425 = vrot.lane.b32.xlu0 %v929_v4, %s854_s14 }
  0x26   : > { %407 = vrot.lane.b32.xlu2 %v929_v4, %s855_s15 }
  0x2d   : > { %413 = vrot.lane.b32.xlu1 %v929_v4, %s856_s16  ;;  %409 = vrot.lane.b32.xlu0 %v934_v6, %s855_s15 }
  0x2e   : > { %415 = vrot.lane.b32.xlu2 %v934_v6, %s856_s16 }
  0x35   : > { %397 = vrot.lane.b32.xlu1 %v934_v6, %s857_s17  ;;  %395 = vrot.lane.b32.xlu0 %v929_v4, %s857_s17 }
  0x36   : > { %401 = vrot.lane.b32.xlu2 %v929_v4, %s858_s18 }
  0x3d   : > { %383 = vrot.lane.b32.xlu1 %v929_v4, %s859_s19  ;;  %403 = vrot.lane.b32.xlu0 %v934_v6, %s858_s18 }
  0x3e   : > { %385 = vrot.lane.b32.xlu2 %v934_v6, %s859_s19 }
  0x45   : > { %391 = vrot.lane.b32.xlu1 %v934_v6, %s860_s20  ;;  %389 = vrot.lane.b32.xlu0 %v929_v4, %s860_s20 }
  0x46   : > { %371 = vrot.lane.b32.xlu2 %v929_v4, %s861_s21 }
  0x4d   : > { %377 = vrot.lane.b32.xlu1 %v929_v4, %s862_s22  ;;  %373 = vrot.lane.b32.xlu0 %v934_v6, %s861_s21 }
  0x4e   : > { %379 = vrot.lane.b32.xlu2 %v934_v6, %s862_s22 }
  0x55   : > { %361 = vrot.lane.b32.xlu1 %v934_v6, %s863_s23  ;;  %359 = vrot.lane.b32.xlu0 %v929_v4, %s863_s23 }
  0x56   : > { %365 = vrot.lane.b32.xlu2 %v929_v4, %s864_s24 }
  0x5d   : > { %367 = vrot.lane.b32.xlu0 %v934_v6, %s864_s24  ;;  %353 = vrot.lane.b32.xlu1 %v929_v4, %s865_s25 }
  0x5e   : > { %355 = vrot.lane.b32.xlu2 %v934_v6, %s865_s25 }
  0x65   : > { %544 = vperm.xlu1 %833, %v341_v48   ;;  %549 = vperm.xlu0 %832, %v342_v49  }
  0x66   : > { %563 = vperm.xlu2 %834, %v344_v51   ;;  %v625_v51 = vld [vmem:[%s1037_s5] sm:$0x3] }
  0x6d   : > { %558 = vperm.xlu1 %833, %v343_v58  }
  0x70   : > { %v420_v7 = vpop.permute.xlu2 %419 }
  0x78   : > { %v422_v8 = vpop.permute.xlu2 %421 }
  0x79   : > { %v424_v21 = vsel %vm423_vm3, %v420_v7, %v422_v8  ;;  %vm597_vm3 = vcmask 7168  }
  0x80   : > { %v408_v11 = vpop.permute.xlu2 %407 }
  0x87   : > { %v438_v9 = vpop.permute.xlu1 %437  ;;  %v432_v10 = vpop.permute.xlu0 %431 }
  0x88   : > { %v416_v18 = vpop.permute.xlu2 %415 }
  0x8f   : > { %v440_v12 = vpop.permute.xlu1 %439  ;;  %v434_v13 = vpop.permute.xlu0 %433 }
  0x90   : > { %v442_v14 = vsel %vm441_vm0, %v438_v9, %v440_v12  ;;  %v436_v15 = vsel %vm435_vm1, %v432_v10, %v434_v13  ;;  %v506_v16 = vsel %vm443_vm2, %v434_v13, %v440_v12  ;;  %v402_v25 = vpop.permute.xlu2 %401  ;;  %v306_v12 = vlaneseq }
  0x91   : > { %528 = vmatpush.bf16.msra.mxu1 %v506_v16  ;;  %v502_v17 = vsel %vm443_vm2, %v436_v15, %v442_v14 }
  0x92   : > { %514 = vmatpush.bf16.msra.mxu0 %v502_v17  ;;  %v307_v13 = vand.u32 127, %v306_v12 }
  0x94   : > { %v308_v15 = vadd.s32 128, %v307_v13  ;;  %v313_v17 = vand.u32 15, %v307_v13 }
  0x96   : > { %v320_v16 = vand.u32 15, %v308_v15 }
  0x97   : > { %v428_v19 = vpop.permute.xlu1 %427  ;;  %v426_v20 = vpop.permute.xlu0 %425 }
  0x98   : > { %v430_v22 = vsel %vm429_vm4, %v426_v20, %v428_v19  ;;  %v498_v23 = vsel %vm443_vm2, %v422_v8, %v428_v19  ;;  %v386_v32 = vpop.permute.xlu2 %385  ;;  %vm334_vm1 = vcmp.lt.s32.totalorder %v320_v16, 13  ;;  %vm649_vm4 = vcmask 1041408  }
  0x99   : > { %529 = vmatpush.bf16.msra.mxu1 %v498_v23  ;;  %v494_v24 = vsel %vm443_vm2, %v424_v21, %v430_v22  ;;  %v867_v22 = vmov 0.0  }
  0x9a   : > { %515 = vmatpush.bf16.msra.mxu0 %v494_v24  ;;  %v791_v23 = vsel %vm334_vm1, 1.0, %v867_v22 }
  0x9f   : > { %v414_v26 = vpop.permute.xlu1 %413  ;;  %v410_v27 = vpop.permute.xlu0 %409 }
  0xa0   : > { %v418_v28 = vsel %vm417_vm5, %v414_v26, %v416_v18  ;;  %v412_v29 = vsel %vm411_vm6, %v408_v11, %v410_v27  ;;  %v490_v30 = vsel %vm443_vm2, %v410_v27, %v416_v18  ;;  %v372_v41 = vpop.permute.xlu2 %371  ;;  %v806_v11 = vld [vmem:[%s1033_s1] sm:$0xff]  ;;  %vm642_vm5 = vcmask 15360  }
  0xa1   : > { %530 = vmatpush.bf16.msra.mxu1 %v490_v30  ;;  %v486_v31 = vsel %vm443_vm2, %v412_v29, %v418_v28 }
  0xa2   : > { %516 = vmatpush.bf16.msra.mxu0 %v486_v31 }
  0xa7   : > { %v398_v33 = vpop.permute.xlu1 %397  ;;  %v396_v34 = vpop.permute.xlu0 %395 }
  0xa8   : > { %v400_v37 = vsel %vm399_vm7, %v396_v34, %v398_v33  ;;  %v380_v52 = vpop.permute.xlu2 %379 }
  0xaf   : > { %v384_v35 = vpop.permute.xlu1 %383  ;;  %v404_v36 = vpop.permute.xlu0 %403 }
  0xb0   : > { %v406_v38 = vsel %vm405_vm8, %v402_v25, %v404_v36  ;;  %v482_v39 = vsel %vm443_vm2, %v398_v33, %v404_v36  ;;  %v388_v44 = vsel %vm387_vm9, %v384_v35, %v386_v32  ;;  %v366_v60 = vpop.permute.xlu2 %365 }
  0xb1   : > { %531 = vmatpush.bf16.msra.mxu1 %v482_v39  ;;  %v478_v40 = vsel %vm443_vm2, %v400_v37, %v406_v38 }
  0xb2   : > { %517 = vmatpush.bf16.msra.mxu0 %v478_v40 }
  0xb7   : > { %v392_v42 = vpop.permute.xlu1 %391  ;;  %v390_v43 = vpop.permute.xlu0 %389 }
  0xb8   : > { %v394_v45 = vsel %vm393_vm10, %v390_v43, %v392_v42  ;;  %v474_v46 = vsel %vm443_vm2, %v386_v32, %v392_v42  ;;  %v356_v63 = vpop.permute.xlu2 %355 }
  0xb9   : > { %532 = vmatpush.bf16.msra.mxu1 %v474_v46  ;;  %v470_v47 = vsel %vm443_vm2, %v388_v44, %v394_v45  ;;  %v450_v9 = vsel %vm443_vm2, %v934_v6, %v356_v63 }
  0xba   : > { %518 = vmatpush.bf16.msra.mxu0 %v470_v47 }
  0xbf   : > { %v378_v53 = vpop.permute.xlu1 %377  ;;  %v374_v54 = vpop.permute.xlu0 %373 }
  0xc0   : > { %v382_v55 = vsel %vm381_vm11, %v378_v53, %v380_v52  ;;  %v376_v56 = vsel %vm375_vm12, %v372_v41, %v374_v54  ;;  %v466_v57 = vsel %vm443_vm2, %v374_v54, %v380_v52  ;;  %v564_v31 = vpop.permute.xlu2 %563 }
  0xc1   : > { %533 = vmatpush.bf16.msra.mxu1 %v466_v57  ;;  %v462_v59 = vsel %vm443_vm2, %v376_v56, %v382_v55 }
  0xc2   : > { %519 = vmatpush.bf16.msra.mxu0 %v462_v59  ;;  %v600_v59 = vld [vmem:[%s1036_s4] sm:$0x3] }
  0xc7   : > { %v362_v61 = vpop.permute.xlu1 %361  ;;  %v360_v62 = vpop.permute.xlu0 %359 }
  0xc8   : > { %v364_v2 = vsel %vm363_vm13, %v360_v62, %v362_v61 }
  0xcf   : > { %v368_v0 = vpop.permute.xlu0 %367  ;;  %v354_v1 = vpop.permute.xlu1 %353 }
  0xd0   : > { %v370_v3 = vsel %vm369_vm14, %v366_v60, %v368_v0  ;;  %v458_v5 = vsel %vm443_vm2, %v362_v61, %v368_v0  ;;  %v358_v7 = vsel %vm357_vm15, %v354_v1, %v356_v63 }
  0xd1   : > { %534 = vmatpush.bf16.msra.mxu1 %v458_v5  ;;  %v454_v8 = vsel %vm443_vm2, %v364_v2, %v370_v3  ;;  %v446_v10 = vsel %vm443_vm2, %v929_v4, %v358_v7  ;;  %vm333_vm2 = vcmp.lt.s32.totalorder %v313_v17, 13  ;;  %v640_v3 = vld [vmem:[%s1039_s7] sm:$0xff]  ;;  %v641_v5 = vld [vmem:[%s1039_s7 + $0x8] sm:$0xff] }
  0xd2   : > { %520 = vmatpush.bf16.msra.mxu0 %v454_v8  ;;  %v790_v26 = vsel %vm333_vm2, 1.0, %v867_v22 }
  0xd5   : > { %535 = vmatpush.bf16.msra.mxu1 %v450_v9 }
  0xd6   : > { %521 = vmatpush.bf16.msra.mxu0 %v446_v10 }
  0xd7   : > { %v545_v14 = vpop.permute.xlu1 %544  ;;  %v550_v28 = vpop.permute.xlu0 %549 }
  0xd8   : > { %536 = vmatmul.bf16.vlgmr.msra.gmra.mxu1 %v806_v11 }
  0xd9   : > { %522 = vmatmul.bf16.vlgmr.msra.gmra.mxu0 %v806_v11 }
  0xdf   : > { %v559_v19 = vpop.permute.xlu1 %558 }
 0x155   : > { %v537_v18 = vpop.f32.mrf.mxu1 }
 0x156   : > { %v553_v6 = vmul.f32 %v545_v14, %v537_v18  ;;  %v523_v20 = vpop.f32.mrf.mxu0 }
 0x157   : > { %v552_v4 = vmul.f32 %v545_v14, %v523_v20 }
 0x158   : > { %v567_v21 = vadd.f32 %v559_v19, %v553_v6 }
 0x159   : > { %v566_v24 = vadd.f32 %v559_v19, %v552_v4 }
 0x15a   : > { %v571_v25 = vmax.f32 %v567_v21, 0.0 }
 0x15b   : > { %v570_v27 = vmax.f32 %v566_v24, 0.0 }
 0x15c   : > { %v575_v29 = vmul.f32 %v791_v23, %v571_v25 }
 0x15d   : > { %v539_v30 = vpop.f32.mrf.mxu1  ;;  %v574_v32 = vmul.f32 %v790_v26, %v570_v27 }
 0x15e   : > { %v555_v33 = vmul.f32 %v550_v28, %v539_v30  ;;  %v525_v34 = vpop.f32.mrf.mxu0  ;;  %v579_v35 = vsel %vm441_vm0, %v575_v29, 0.0  ;;  %v589_v48 = vsel %vm441_vm0, %v575_v29, -inf }
 0x15f   : > { %v554_v36 = vmul.f32 %v550_v28, %v525_v34  ;;  %v580_v37 = vadd.f32 %v579_v35, %v574_v32  ;;  %v590_v49 = vmax.f32 %v574_v32, %v589_v48 }
 0x160   : > { %v569_v38 = vadd.f32 %v564_v31, %v555_v33 }
 0x161   : > { %v568_v39 = vadd.f32 %v564_v31, %v554_v36  ;;  %581 = vadd.xlane.f32.xlu0 %v580_v37 }
 0x162   : > { %v573_v40 = vmax.f32 %v569_v38, 0.0 }
 0x163   : > { %v572_v41 = vmax.f32 %v568_v39, 0.0 }
 0x164   : > { %v577_v42 = vmul.f32 %v791_v23, %v573_v40 }
 0x165   : > { %v576_v43 = vmul.f32 %v790_v26, %v572_v41 }
 0x166   : > { %v593_v44 = vsel %vm441_vm0, %v577_v42, -inf  ;;  %v583_v45 = vsel %vm441_vm0, %v577_v42, 0.0  ;;  %vm601_vm0 = vcmask 130048  }
 0x167   : > { %v594_v46 = vmax.f32 %v576_v43, %v593_v44  ;;  %v584_v47 = vadd.f32 %v583_v45, %v576_v43 }
 0x169   : > { %595 = vmax.xlane.f32.xlu1 %v594_v46  ;;  %585 = vadd.xlane.f32.xlu2 %v584_v47 }
 0x171   : > { %591 = vmax.xlane.f32.xlu2 %v590_v49 }
 0x175   : > { %635 = vperm.xlu0 %832, %v632_v50  }
 0x189   : > { %628 = vperm.xlu2 %834, %v625_v51  }
 0x1d4   : > { %v582_v56 = vpop.xlane.xlu0 %581 }
 0x1d5   : > { %v587_v57 = vmul.f32 0.00591716, %v582_v56 }
 0x1dc   : > { %v586_v52 = vpop.xlane.xlu2 %585  ;;  %v596_v54 = vpop.xlane.xlu1 %595 }
 0x1dd   : > { %v588_v53 = vmul.f32 0.00591716, %v586_v52 }
 0x1df   : > { %v599_v55 = vsel %vm597_vm3, %v588_v53, %v596_v54 }
 0x1e0   : > { %619 = vmatpush.msra.mxu2 %v599_v55 }
 0x1e4   : > { %v592_v58 = vpop.xlane.xlu2 %591 }
 0x1e5   : > { %v598_v60 = vsel %vm597_vm3, %v587_v57, %v592_v58 }
 0x1e6   : > { %620 = vmatpush.msra.mxu2 %v598_v60 }
 0x1e7   : > { %796 = vmatmul.msk.f32.vlgmr.msra.gmra.mxu2 %vm601_vm0, %v600_v59  ;;  %v636_v0 = vpop.permute.xlu0 %635 }
 0x1ec   : > { %v629_v61 = vpop.permute.xlu2 %628 }
 0x26a   : > { %v622_v62 = vpop.f32.mrf.mxu2 }
 0x26b   : > { %v631_v63 = vmul.f32 %v629_v61, %v622_v62 }
 0x26d   : > { %v638_v1 = vadd.f32 %v636_v0, %v631_v63 }
 0x26f   : > { %v639_v2 = vmax.f32 %v638_v1, 0.0 }
 0x271   : > { %797 = vmatpush.msk.msra.mxu3 %vm649_vm4, %v639_v2 }
 0x272   : > { %798 = vmatmul.msk.f32.vlgmr.msra.gmra.mxu3 %vm642_vm5, %v640_v3 }
 0x27a   : > { %799 = vmatmul.msk.f32.gmra.mxu3 %vm642_vm5, %v641_v5 }
 0x2f5   : > { %v670_v7 = vpop.f32.mrf.mxu3 }
 0x2f6   : > { %678 = vrot.lane.b32.xlu1 %v670_v7, %s865_s25 }
 0x2fd   : > { %v673_v8 = vpop.f32.mrf.mxu3 }
 0x2fe   : > { %680 = vrot.lane.b32.xlu0 %v673_v8, %s865_s25 }
 0x368   : > { %v679_v9 = vpop.permute.xlu1 %678 }
 0x369   : > { %v684_v10 = vadd.f32 %v679_v9, %v670_v7 }
 0x36b   : > { %v800_v11 = vmul.f32 -1.442695, %v684_v10 }
 0x36d   : > { %835 = vpow2.f32 %v800_v11 }
 0x370   : > { %v681_v12 = vpop.permute.xlu0 %680 }
 0x371   : > { %v685_v13 = vadd.f32 %v681_v12, %v673_v8 }
 0x373   : > { %v836_v14 = vpop.eup %835  ;;  %v801_v15 = vmul.f32 -1.442695, %v685_v13 }
 0x374   : > { %v692_v16 = vadd.f32 1.0, %v836_v14 }
 0x375   : > { %837 = vpow2.f32 %v801_v15 }
 0x376   : > { %839 = vrcp.f32 %v692_v16  ;;  %v705_v4 = vand.u32 2147483648, %v692_v16  ;;  %v703_v22 = vand.u32 2147483647, %v692_v16  ;;  %vm699_vm7 = vweird.f32 %v692_v16 }
 0x378   : > { %v706_v25 = vor.u32 1.1754944e-38, %v705_v4  ;;  %vm704_vm9 = vcmp.eq.f32.partialorder %v703_v22, 8.507059e+37 }
 0x37b   : > { %v838_v17 = vpop.eup %837 }
 0x37c   : > { %v840_v18 = vpop.eup %839  ;;  %v693_v19 = vadd.f32 1.0, %v838_v17 }
 0x37d   : > { %v695_v6 = vmul.f32 %v840_v18, %v692_v16  ;;  %vm700_vm6 = vweird.f32 %v840_v18 }
 0x37e   : > { %841 = vrcp.f32 %v693_v19  ;;  %vm701_vm8 = vmor %vm699_vm7, %vm700_vm6  ;;  %v720_v30 = vand.u32 2147483648, %v693_v19  ;;  %v718_v32 = vand.u32 2147483647, %v693_v19  ;;  %vm714_vm11 = vweird.f32 %v693_v19 }
 0x37f   : > { %v696_v20 = vsub.f32 1.0, %v695_v6 }
 0x380   : > { %v721_v34 = vor.u32 1.1754944e-38, %v720_v30  ;;  %vm719_vm13 = vcmp.eq.f32.partialorder %v718_v32, 8.507059e+37 }
 0x381   : > { %v697_v21 = vmul.f32 %v840_v18, %v696_v20 }
 0x383   : > { %v698_v23 = vadd.f32 %v840_v18, %v697_v21 }
 0x384   : > { %v842_v24 = vpop.eup %841 }
 0x385   : > { %v702_v26 = vsel %vm701_vm8, %v840_v18, %v698_v23  ;;  %v710_v27 = vmul.f32 %v842_v24, %v693_v19  ;;  %vm715_vm10 = vweird.f32 %v842_v24 }
 0x386   : > { %v707_v28 = vsel %vm704_vm9, %v706_v25, %v702_v26  ;;  %vm716_vm12 = vmor %vm714_vm11, %vm715_vm10 }
 0x387   : > { %724 = vst.msk [vmem:[%s305_s10] sm:$0xff] %vm597_vm3, %v707_v28  ;;  %v711_v29 = vsub.f32 1.0, %v710_v27 }
 0x389   : > { %v712_v31 = vmul.f32 %v842_v24, %v711_v29 }
 0x38b   : > { %v713_v33 = vadd.f32 %v842_v24, %v712_v31 }
 0x38d   : > { %v717_v35 = vsel %vm716_vm12, %v842_v24, %v713_v33 }
 0x38e   : > { %v722_v36 = vsel %vm719_vm13, %v721_v34, %v717_v35 }
 0x38f   : > { %725 = vst.msk [vmem:[%s305_s10 + $0x8] sm:$0xff] %vm597_vm3, %v722_v36 }
 0x390 PF: > { %s18_s27 = sadd.s32 1, %s849_s27  }
 0x391   : > { %p15_p4 = scmp.ge.s32.totalorder %s18_s27, 4  }
 0x393   :  { %17 = sbr.rel (!%p15_p4) target bundleno = 1 (0x1), region = 82 }

</bundles_post_ra>
